<compile_context>
chip_gen: v6e
topology: v6e:2x2x1
jax: 0.10.0
libtpu: 0.0.40
codegen_flags: <defaults>
</compile_context>

<pallas_src>
import functools

import jax
import jax.numpy as jnp
from jax import lax
from jax.experimental import pallas as pl
from jax.experimental.pallas import tpu as pltpu

EPS = 1e-5
NEG_SLOPE = 0.1
LANE = 128


def _round_up(v, m):
    return (v + m - 1) // m * m


@functools.lru_cache(maxsize=None)
def _vmem_budget_bytes():
    # ~75% of physical VMEM: v5e/v6e (128 MiB) -> 96 MiB, v7x (64 MiB) -> 48 MiB.
    try:
        cap = int(pltpu.get_tpu_info().vmem_capacity_bytes)
    except Exception:
        cap = 64 * 1024 * 1024
    return max(32 * 1024 * 1024, (cap * 3) // 4)


# ---------------- Pass 1: conv-as-matmul + per-tile BN partial stats ----------------
def conv_stats_kernel(p_ref, w_ref, y_ref, stats_ref):
    # p_ref:     (TILE_M, K_pad)    bf16   im2col patch tile
    # w_ref:     (K_pad, TILE_N)    bf16   flattened conv-weight column block
    # y_ref:     (TILE_M, TILE_N)   bf16   pre-BN conv output tile (write-once intermediate)
    # stats_ref: (1, 2, TILE_N)     f32    row 0 = sum(y), row 1 = sum(y*y) of this tile
    y = jnp.dot(p_ref[...], w_ref[...], preferred_element_type=jnp.float32)
    s1 = jnp.sum(y, axis=0, keepdims=True)        # (1, TILE_N)  from the f32 accumulator
    s2 = jnp.sum(y * y, axis=0, keepdims=True)    # (1, TILE_N)
    stats_ref[...] = jnp.concatenate([s1, s2], axis=0)[None]
    y_ref[...] = y.astype(y_ref.dtype)            # bf16 store of the intermediate


# ---------------- Pass 2: fused BN affine + LeakyReLU epilogue ----------------------
def bn_lrelu_kernel(y_ref, scale_ref, shift_ref, o_ref):
    # Upcast bf16 y to f32 before the per-channel FMA so BN math stays f32 (also the
    # right choice on v5e, whose VPU has no bf16 datapath).
    y = y_ref[...].astype(jnp.float32)
    z = y * scale_ref[...] + shift_ref[...]
    o_ref[...] = jnp.where(z > 0, z, NEG_SLOPE * z).astype(o_ref.dtype)


@functools.partial(
    jax.jit,
    static_argnames=("stride", "padding", "tile_m", "tile_m2", "nchw_output"))
def cnn_block_forward(x, w, gamma, beta, *, stride=1, padding=1,
                      tile_m=256, tile_m2=1024, nchw_output=True):
    """x: [N, C_in, H, W] (NCHW), w: [C_out, C_in, kh, kw] (OIHW)."""
    N, C_in, H, W = x.shape
    C_out, _, kh, kw = w.shape
    ph = pw = padding
    H_out = (H + 2 * ph - kh) // stride + 1
    W_out = (W + 2 * pw - kw) // stride + 1

    # --- im2col glue; cast to bf16 BEFORE the 9x blow-up to halve its HBM traffic ---
    xp = jnp.pad(x.astype(jnp.bfloat16), ((0, 0), (0, 0), (ph, ph), (pw, pw)))
    taps = []
    for di in range(kh):
        for dj in range(kw):
            taps.append(
                xp[:, :, di:di + stride * H_out:stride, dj:dj + stride * W_out:stride])
    patches = jnp.stack(taps, axis=2)                       # [N, C_in, kh*kw, H_out, W_out]
    patches = patches.transpose(0, 3, 4, 1, 2).reshape(
        N * H_out * W_out, C_in * kh * kw)                  # [M, K] bf16

    M, K = patches.shape
    K_pad = _round_up(K, LANE)
    C_pad = _round_up(C_out, LANE)

    # Pass-2 tile (mem-bound epilogue): as large as reasonable, kept a multiple of the
    # pass-1 tile so a single padded M works for both grids.
    tile_m2 = max(tile_m, (min(tile_m2, _round_up(M, tile_m)) // tile_m) * tile_m)
    M_pad = _round_up(M, tile_m2)
    grid_m = M_pad // tile_m
    grid_m2 = M_pad // tile_m2

    # C_out tiling keeps per-step VMEM bounded for deep 1024-channel layers on v7x
    # (MXU on v6e/v7x is 256-wide, so prefer 256 when it divides C_pad).
    tile_n = 256 if C_pad % 256 == 0 else 128
    tile_n = min(tile_n, C_pad)
    grid_n = C_pad // tile_n

    # Zero-padding of rows / K / C_out contributes exactly 0 to matmul and stats.
    patches = jnp.pad(patches, ((0, M_pad - M), (0, K_pad - K)))
    w2d = w.reshape(C_out, K).T.astype(jnp.bfloat16)        # [K, C_out], matches patch K-order
    w2d = jnp.pad(w2d, ((0, K_pad - K), (0, C_pad - C_out)))

    vmem_budget = _vmem_budget_bytes()
    cparams1 = pltpu.CompilerParams(
        dimension_semantics=("parallel", "parallel"),        # both axes independent
        vmem_limit_bytes=vmem_budget)
    cparams2 = pltpu.CompilerParams(
        dimension_semantics=("parallel",),
        vmem_limit_bytes=vmem_budget)

    cost1 = pl.CostEstimate(
        flops=2 * M_pad * K_pad * C_pad,
        transcendentals=0,
        bytes_accessed=(patches.size * 2                     # patches read once per M tile
                        + w2d.size * 2 * grid_m              # weight cols re-read per M tile
                        + M_pad * C_pad * 2                  # bf16 y store
                        + grid_m * 2 * C_pad * 4))           # partial stats

    y, stats = pl.pallas_call(
        conv_stats_kernel,
        out_shape=(jax.ShapeDtypeStruct((M_pad, C_pad), jnp.bfloat16),
                   jax.ShapeDtypeStruct((grid_m, 2, C_pad), jnp.float32)),
        grid=(grid_m, grid_n),
        in_specs=[pl.BlockSpec((tile_m, K_pad), lambda i, j: (i, 0)),
                  pl.BlockSpec((K_pad, tile_n), lambda i, j: (0, j))],
        out_specs=(pl.BlockSpec((tile_m, tile_n), lambda i, j: (i, j)),
                   pl.BlockSpec((1, 2, tile_n), lambda i, j: (i, 0, j))),
        compiler_params=cparams1,
        cost_estimate=cost1,
    )(patches, w2d)

    # --- tiny per-channel reduction + fold BN into (scale, shift) (glue, O(C)) ---
    total = jnp.sum(stats[:, 0, :], axis=0)                  # (C_pad,)
    total_sq = jnp.sum(stats[:, 1, :], axis=0)
    mean = total / M                                         # divide by TRUE M (padded rows are 0)
    var = jnp.maximum(total_sq / M - mean * mean, 0.0)
    gamma_p = jnp.pad(gamma.astype(jnp.float32), (0, C_pad - C_out))
    beta_p = jnp.pad(beta.astype(jnp.float32), (0, C_pad - C_out))
    scale = gamma_p * lax.rsqrt(var + EPS)
    shift = beta_p - mean * scale

    cost2 = pl.CostEstimate(
        flops=3 * M_pad * C_pad, transcendentals=0,
        bytes_accessed=M_pad * C_pad * 2 + M_pad * C_pad * 4 + 2 * C_pad * 4)

    out2d = pl.pallas_call(
        bn_lrelu_kernel,
        out_shape=jax.ShapeDtypeStruct((M_pad, C_pad), jnp.float32),
        grid=(grid_m2,),
        in_specs=[pl.BlockSpec((tile_m2, C_pad), lambda i: (i, 0)),
                  pl.BlockSpec((1, C_pad), lambda i: (0, 0)),
                  pl.BlockSpec((1, C_pad), lambda i: (0, 0))],
        out_specs=pl.BlockSpec((tile_m2, C_pad), lambda i: (i, 0)),
        compiler_params=cparams2,
        cost_estimate=cost2,
    )(y, scale.reshape(1, C_pad), shift.reshape(1, C_pad))

    out = out2d[:M, :C_out].reshape(N, H_out, W_out, C_out)
    if nchw_output:
        # Module contract is NCHW; the transpose is a full extra read+write of the
        # output in XLA -- pass nchw_output=False if the consumer accepts NHWC.
        out = out.transpose(0, 3, 1, 2)
    return out


def reference_forward(x, w, gamma, beta, *, stride=1, padding=1):
    """bf16-consistent pure-JAX reference mirroring the PyTorch forward (training-mode BN)."""
    y = lax.conv_general_dilated(
        x.astype(jnp.bfloat16), w.astype(jnp.bfloat16),
        window_strides=(stride, stride),
        padding=[(padding, padding), (padding, padding)],
        dimension_numbers=("NCHW", "OIHW", "NCHW"),
        preferred_element_type=jnp.float32)
    mean = y.mean(axis=(0, 2, 3), keepdims=True)
    var = ((y - mean) ** 2).mean(axis=(0, 2, 3), keepdims=True)
    z = (y - mean) * lax.rsqrt(var + EPS) * gamma.reshape(1, -1, 1, 1) \
        + beta.reshape(1, -1, 1, 1)
    return jnp.where(z > 0, z, NEG_SLOPE * z)


if __name__ == "__main__":
    # CNNBlock(in_channels=4, out_channels=8, kernel_size=3, stride=1, padding=1)
    N, C_in, H, W = 2, 4, 16, 16
    C_out, kh, kw = 8, 3, 3

    key = jax.random.PRNGKey(0)
    kx, kw_, kg, kb = jax.random.split(key, 4)
    x = jax.random.normal(kx, (N, C_in, H, W), dtype=jnp.float32)
    w = jax.random.normal(kw_, (C_out, C_in, kh, kw), dtype=jnp.float32) * 0.1
    gamma = 1.0 + 0.1 * jax.random.normal(kg, (C_out,), dtype=jnp.float32)
    beta = 0.1 * jax.random.normal(kb, (C_out,), dtype=jnp.float32)

    out = jax.block_until_ready(cnn_block_forward(x, w, gamma, beta))
    ref = reference_forward(x, w, gamma, beta)

    assert out.shape == (N, C_out, H, W)
    # matmul runs in bf16 (f32 accumulation) and the pre-BN intermediate is stored in
    # bf16, so compare against a bf16-consistent reference with matching tolerance.
    assert jnp.allclose(out, ref, atol=2e-2, rtol=2e-2), "mismatch vs reference"

    print("KERNEL_OK")
</pallas_src>

<mosaic_0001>
module attributes {stable_mosaic.version = 11 : i64} {
  func.func @conv_stats_kernel(%arg0: i32, %arg1: i32, %arg2: memref<256x128xbf16, #tpu.memory_space<vmem>>, %arg3: memref<128x128xbf16, #tpu.memory_space<vmem>>, %arg4: memref<256x128xbf16, #tpu.memory_space<vmem>>, %arg5: memref<1x2x128xf32, #tpu.memory_space<vmem>>) attributes {dimension_semantics = [#tpu.dimension_semantics<parallel>, #tpu.dimension_semantics<parallel>], iteration_bounds = array<i64: 2, 1>, scalar_prefetch = 0 : i64, scratch_operands = 0 : i64, tpu.core_type = #tpu.core_type<tc>, window_params = [{transform_indices = @transform_0, window_bounds = array<i64: 256, 128>}, {transform_indices = @transform_1, window_bounds = array<i64: 128, 128>}, {transform_indices = @transform_2, window_bounds = array<i64: 256, 128>}, {transform_indices = @transform_3, window_bounds = array<i64: 1, 2, 128>}]} {
    %c0 = arith.constant 0 : index
    %c0_0 = arith.constant 0 : index
    %0 = vector.load %arg2[%c0, %c0_0] : memref<256x128xbf16, #tpu.memory_space<vmem>>, vector<256x128xbf16>
    %c0_1 = arith.constant 0 : index
    %c0_2 = arith.constant 0 : index
    %1 = vector.load %arg3[%c0_1, %c0_2] : memref<128x128xbf16, #tpu.memory_space<vmem>>, vector<128x128xbf16>
    %cst = arith.constant dense<0.000000e+00> : vector<256x128xf32>
    %2 = tpu.matmul %0, %1, %cst {dimension_numbers = #tpu.dot_dimension_numbers<[1], [0], [0], [1], [0, 0, 1, 1], [], []>} : vector<256x128xbf16>, vector<128x128xbf16>, vector<256x128xf32> -> vector<256x128xf32>
    %cst_3 = arith.constant dense<0.000000e+00> : vector<128xf32>
    %3 = vector.multi_reduction <add>, %2, %cst_3 [0] : vector<256x128xf32> to vector<128xf32>
    %4 = vector.shape_cast %3 : vector<128xf32> to vector<1x128xf32>
    %5 = arith.mulf %2, %2 : vector<256x128xf32>
    %cst_4 = arith.constant dense<0.000000e+00> : vector<128xf32>
    %6 = vector.multi_reduction <add>, %5, %cst_4 [0] : vector<256x128xf32> to vector<128xf32>
    %7 = vector.shape_cast %6 : vector<128xf32> to vector<1x128xf32>
    %8 = tpu.concatenate %4, %7 in 0 : vector<1x128xf32>, vector<1x128xf32> -> vector<2x128xf32>
    %9 = vector.shape_cast %8 : vector<2x128xf32> to vector<1x2x128xf32>
    %c0_5 = arith.constant 0 : index
    %c0_6 = arith.constant 0 : index
    %c0_7 = arith.constant 0 : index
    %10 = vector.load %arg5[%c0_5, %c0_6, %c0_7] : memref<1x2x128xf32, #tpu.memory_space<vmem>>, vector<1x2x128xf32>
    tpu.vector_store %arg5[%c0_5, %c0_6, %c0_7], %9 {strides = array<i32>} : memref<1x2x128xf32, #tpu.memory_space<vmem>>, vector<1x2x128xf32>,
    %11 = arith.truncf %2 : vector<256x128xf32> to vector<256x128xbf16>
    %c0_8 = arith.constant 0 : index
    %c0_9 = arith.constant 0 : index
    %12 = vector.load %arg4[%c0_8, %c0_9] : memref<256x128xbf16, #tpu.memory_space<vmem>>, vector<256x128xbf16>
    tpu.vector_store %arg4[%c0_8, %c0_9], %11 {strides = array<i32>} : memref<256x128xbf16, #tpu.memory_space<vmem>>, vector<256x128xbf16>,
    return
  }
  func.func @transform_0(%arg0: i32, %arg1: i32) -> (i32, i32) {
    %c0_i32 = arith.constant 0 : i32
    %c0_i32_0 = arith.constant 0 : i32
    return %arg0, %c0_i32 : i32, i32
  }
  func.func @transform_1(%arg0: i32, %arg1: i32) -> (i32, i32) {
    %c0_i32 = arith.constant 0 : i32
    %c0_i32_0 = arith.constant 0 : i32
    return %c0_i32, %arg1 : i32, i32
  }
  func.func @transform_2(%arg0: i32, %arg1: i32) -> (i32, i32) {
    %c0_i32 = arith.constant 0 : i32
    return %arg0, %arg1 : i32, i32
  }
  func.func @transform_3(%arg0: i32, %arg1: i32) -> (i32, i32, i32) {
    %c0_i32 = arith.constant 0 : i32
    %c0_i32_0 = arith.constant 0 : i32
    return %arg0, %c0_i32, %arg1 : i32, i32, i32
  }
}

module attributes {stable_mosaic.version = 11 : i64} {
  func.func @bn_lrelu_kernel(%arg0: i32, %arg1: memref<512x128xbf16, #tpu.memory_space<vmem>>, %arg2: memref<1x128xf32, #tpu.memory_space<vmem>>, %arg3: memref<1x128xf32, #tpu.memory_space<vmem>>, %arg4: memref<512x128xf32, #tpu.memory_space<vmem>>) attributes {dimension_semantics = [#tpu.dimension_semantics<parallel>], iteration_bounds = array<i64: 1>, scalar_prefetch = 0 : i64, scratch_operands = 0 : i64, tpu.core_type = #tpu.core_type<tc>, window_params = [{transform_indices = @transform_0, window_bounds = array<i64: 512, 128>}, {pipeline_mode = #tpu.pipeline_mode<synchronous>, transform_indices = @transform_1, window_bounds = array<i64: 1, 128>}, {pipeline_mode = #tpu.pipeline_mode<synchronous>, transform_indices = @transform_2, window_bounds = array<i64: 1, 128>}, {transform_indices = @transform_3, window_bounds = array<i64: 512, 128>}]} {
    %c0 = arith.constant 0 : index
    %c0_0 = arith.constant 0 : index
    %0 = vector.load %arg1[%c0, %c0_0] : memref<512x128xbf16, #tpu.memory_space<vmem>>, vector<512x128xbf16>
    %1 = arith.extf %0 : vector<512x128xbf16> to vector<512x128xf32>
    %c0_1 = arith.constant 0 : index
    %c0_2 = arith.constant 0 : index
    %2 = vector.load %arg2[%c0_1, %c0_2] : memref<1x128xf32, #tpu.memory_space<vmem>>, vector<1x128xf32>
    %3 = vector.broadcast %2 : vector<1x128xf32> to vector<512x128xf32>
    %4 = arith.mulf %1, %3 : vector<512x128xf32>
    %c0_3 = arith.constant 0 : index
    %c0_4 = arith.constant 0 : index
    %5 = vector.load %arg3[%c0_3, %c0_4] : memref<1x128xf32, #tpu.memory_space<vmem>>, vector<1x128xf32>
    %6 = vector.broadcast %5 : vector<1x128xf32> to vector<512x128xf32>
    %7 = arith.addf %4, %6 : vector<512x128xf32>
    %cst = arith.constant 0.000000e+00 : f32
    %8 = vector.broadcast %cst : f32 to vector<512x128xf32>
    %9 = arith.cmpf ogt, %7, %8 : vector<512x128xf32>
    %cst_5 = arith.constant 1.000000e-01 : f32
    %10 = vector.broadcast %cst_5 : f32 to vector<512x128xf32>
    %11 = arith.mulf %10, %7 : vector<512x128xf32>
    %12 = arith.select %9, %7, %11 : vector<512x128xi1>, vector<512x128xf32>
    %c0_6 = arith.constant 0 : index
    %c0_7 = arith.constant 0 : index
    %13 = vector.load %arg4[%c0_6, %c0_7] : memref<512x128xf32, #tpu.memory_space<vmem>>, vector<512x128xf32>
    tpu.vector_store %arg4[%c0_6, %c0_7], %12 {strides = array<i32>} : memref<512x128xf32, #tpu.memory_space<vmem>>, vector<512x128xf32>,
    return
  }
  func.func @transform_0(%arg0: i32) -> (i32, i32) {
    %c0_i32 = arith.constant 0 : i32
    %c0_i32_0 = arith.constant 0 : i32
    return %arg0, %c0_i32 : i32, i32
  }
  func.func @transform_1(%arg0: i32) -> (i32, i32) {
    %c0_i32 = arith.constant 0 : i32
    %c0_i32_0 = arith.constant 0 : i32
    %c0_i32_1 = arith.constant 0 : i32
    return %c0_i32, %c0_i32_0 : i32, i32
  }
  func.func @transform_2(%arg0: i32) -> (i32, i32) {
    %c0_i32 = arith.constant 0 : i32
    %c0_i32_0 = arith.constant 0 : i32
    %c0_i32_1 = arith.constant 0 : i32
    return %c0_i32, %c0_i32_0 : i32, i32
  }
  func.func @transform_3(%arg0: i32) -> (i32, i32) {
    %c0_i32 = arith.constant 0 : i32
    %c0_i32_0 = arith.constant 0 : i32
    return %arg0, %c0_i32 : i32, i32
  }
}

</mosaic_0001>

<bundles_post_ra>
// kernel: cnn_block_forward.3
= control target key start
LH: loop header
LB: loop body
LE: loop exit
PB: predicated region body
PF: predicated region fallthrough
CT: control target
= control target key end

     0   :  { %s1151_s0 = inlined_call_operand.vmem [shape: bf16[512,128], index: 0, kind: input, shape index: {}]   ;;  %s1152_s1 = inlined_call_operand.vmem [shape: f32[1,128], index: 1, kind: input, shape index: {}]   ;;  %s1153_s2 = inlined_call_operand.vmem [shape: f32[1,128], index: 2, kind: input, shape index: {}]   ;;  %s1154_s3 = inlined_call_operand.vmem [shape: f32[512,128], index: 3, kind: output, shape index: {}]  }
   0x1   :  { %v547_v0 = vld [vmem:[%s1151_s0] sm:$0xff]   ;;  %v674_v4 = vld [vmem:[%s1151_s0 + $0x8] sm:$0xff]   ;;  %v675_v5 = vld [vmem:[%s1151_s0 + $0x10] sm:$0xff]  }
   0x2   :  { %v731_v1 = vld [vmem:[%s1152_s1] ss:$0 sm:$0xff]  ;;  %v548_v2 = vunpack.c.l.bf16 %v547_v0  ;;  %v549_v3 = vunpack.c.h.bf16 %v547_v0  ;;  %v676_v6 = vld [vmem:[%s1151_s0 + $0x18] sm:$0xff]   ;;  %v552_v8 = vunpack.c.l.bf16 %v674_v4  ;;  %v553_v9 = vunpack.c.h.bf16 %v674_v4  ;;  %v678_v36 = vld [vmem:[%s1151_s0 + $0x28] sm:$0xff]  }
   0x3   :  { %v745_v7 = vld [vmem:[%s1153_s2] ss:$0 sm:$0xff]  ;;  %v556_v10 = vunpack.c.l.bf16 %v675_v5  ;;  %v557_v11 = vunpack.c.h.bf16 %v675_v5  ;;  %v560_v14 = vunpack.c.l.bf16 %v676_v6  ;;  %v561_v15 = vunpack.c.h.bf16 %v676_v6  ;;  %v679_v48 = vld [vmem:[%s1151_s0 + $0x30] sm:$0xff]   ;;  %v680_v55 = vld [vmem:[%s1151_s0 + $0x38] sm:$0xff]  }
   0x4   :  { %v149_v12 = vmul.f32 %v548_v2, %v731_v1  ;;  %v150_v13 = vmul.f32 %v549_v3, %v731_v1  ;;  %v151_v16 = vmul.f32 %v552_v8, %v731_v1  ;;  %v152_v17 = vmul.f32 %v553_v9, %v731_v1  ;;  %v677_v28 = vld [vmem:[%s1151_s0 + $0x20] sm:$0xff]  }
   0x5   :  { %v153_v18 = vmul.f32 %v556_v10, %v731_v1  ;;  %v154_v19 = vmul.f32 %v557_v11, %v731_v1  ;;  %v155_v22 = vmul.f32 %v560_v14, %v731_v1  ;;  %v156_v23 = vmul.f32 %v561_v15, %v731_v1  ;;  %v681_v14 = vld [vmem:[%s1151_s0 + $0x40] sm:$0xff]  }
   0x6   :  { %v220_v20 = vadd.f32 %v745_v7, %v149_v12  ;;  %v221_v21 = vadd.f32 %v745_v7, %v150_v13  ;;  %v222_v24 = vadd.f32 %v745_v7, %v151_v16  ;;  %v223_v25 = vadd.f32 %v745_v7, %v152_v17 }
   0x7   :  { %v224_v26 = vadd.f32 %v745_v7, %v153_v18  ;;  %v225_v27 = vadd.f32 %v745_v7, %v154_v19  ;;  %v226_v41 = vadd.f32 %v745_v7, %v155_v22  ;;  %v227_v42 = vadd.f32 %v745_v7, %v156_v23  ;;  %v682_v19 = vld [vmem:[%s1151_s0 + $0x48] sm:$0xff]  }
   0x8   :  { %vm284_vm0 = vcmp.gt.f32.partialorder %v220_v20, 0.0  ;;  %v348_v29 = vmul.f32 0.1, %v220_v20  ;;  %vm285_vm1 = vcmp.gt.f32.partialorder %v221_v21, 0.0  ;;  %v349_v30 = vmul.f32 0.1, %v221_v21 }
   0x9   :  { %vm286_vm2 = vcmp.gt.f32.partialorder %v222_v24, 0.0  ;;  %v350_v31 = vmul.f32 0.1, %v222_v24  ;;  %vm287_vm3 = vcmp.gt.f32.partialorder %v223_v25, 0.0  ;;  %v351_v32 = vmul.f32 0.1, %v223_v25 }
   0xa   :  { %v412_v33 = vsel %vm284_vm0, %v220_v20, %v348_v29  ;;  %v413_v34 = vsel %vm285_vm1, %v221_v21, %v349_v30  ;;  %vm288_vm4 = vcmp.gt.f32.partialorder %v224_v26, 0.0  ;;  %v352_v35 = vmul.f32 0.1, %v224_v26  ;;  %v683_v30 = vld [vmem:[%s1151_s0 + $0x50] sm:$0xff]  }
   0xb   :  { %476 = vst [vmem:[%s1154_s3] sm:$0xff] %v412_v33  ;;  %477 = vst [vmem:[%s1154_s3 + $0x8] sm:$0xff] %v413_v34  ;;  %v414_v37 = vsel %vm286_vm2, %v222_v24, %v350_v31  ;;  %v415_v38 = vsel %vm287_vm3, %v223_v25, %v351_v32  ;;  %vm289_vm5 = vcmp.gt.f32.partialorder %v225_v27, 0.0  ;;  %v353_v39 = vmul.f32 0.1, %v225_v27 }
   0xc   :  { %478 = vst [vmem:[%s1154_s3 + $0x10] sm:$0xff] %v414_v37  ;;  %479 = vst [vmem:[%s1154_s3 + $0x18] sm:$0xff] %v415_v38  ;;  %v416_v40 = vsel %vm288_vm4, %v224_v26, %v352_v35  ;;  %v564_v43 = vunpack.c.l.bf16 %v677_v28  ;;  %v565_v45 = vunpack.c.h.bf16 %v677_v28  ;;  %v568_v46 = vunpack.c.l.bf16 %v678_v36  ;;  %v684_v37 = vld [vmem:[%s1151_s0 + $0x58] sm:$0xff]  }
   0xd   :  { %480 = vst [vmem:[%s1154_s3 + $0x20] sm:$0xff] %v416_v40  ;;  %v417_v44 = vsel %vm289_vm5, %v225_v27, %v353_v39  ;;  %v569_v47 = vunpack.c.h.bf16 %v678_v36  ;;  %vm290_vm6 = vcmp.gt.f32.partialorder %v226_v41, 0.0  ;;  %v354_v49 = vmul.f32 0.1, %v226_v41 }
   0xe   :  { %481 = vst [vmem:[%s1154_s3 + $0x28] sm:$0xff] %v417_v44  ;;  %vm291_vm7 = vcmp.gt.f32.partialorder %v227_v42, 0.0  ;;  %v355_v50 = vmul.f32 0.1, %v227_v42  ;;  %v157_v51 = vmul.f32 %v564_v43, %v731_v1  ;;  %v158_v52 = vmul.f32 %v565_v45, %v731_v1 }
   0xf   :  { %v159_v53 = vmul.f32 %v568_v46, %v731_v1  ;;  %v160_v54 = vmul.f32 %v569_v47, %v731_v1  ;;  %v418_v56 = vsel %vm290_vm6, %v226_v41, %v354_v49  ;;  %v572_v58 = vunpack.c.l.bf16 %v679_v48 }
  0x10   :  { %v419_v57 = vsel %vm291_vm7, %v227_v42, %v355_v50  ;;  %v573_v59 = vunpack.c.h.bf16 %v679_v48  ;;  %482 = vst [vmem:[%s1154_s3 + $0x30] sm:$0xff] %v418_v56  ;;  %v228_v60 = vadd.f32 %v745_v7, %v157_v51  ;;  %v229_v61 = vadd.f32 %v745_v7, %v158_v52 }
  0x11   :  { %483 = vst [vmem:[%s1154_s3 + $0x38] sm:$0xff] %v419_v57  ;;  %v230_v62 = vadd.f32 %v745_v7, %v159_v53  ;;  %v231_v63 = vadd.f32 %v745_v7, %v160_v54  ;;  %v161_v0 = vmul.f32 %v572_v58, %v731_v1  ;;  %v576_v3 = vunpack.c.l.bf16 %v680_v55  ;;  %v685_v58 = vld [vmem:[%s1151_s0 + $0x60] sm:$0xff]  }
  0x12   :  { %v162_v2 = vmul.f32 %v573_v59, %v731_v1  ;;  %v577_v4 = vunpack.c.h.bf16 %v680_v55  ;;  %vm292_vm8 = vcmp.gt.f32.partialorder %v228_v60, 0.0  ;;  %v356_v5 = vmul.f32 0.1, %v228_v60 }
  0x13   :  { %vm293_vm9 = vcmp.gt.f32.partialorder %v229_v61, 0.0  ;;  %v357_v6 = vmul.f32 0.1, %v229_v61  ;;  %vm294_vm10 = vcmp.gt.f32.partialorder %v230_v62, 0.0  ;;  %v358_v8 = vmul.f32 0.1, %v230_v62 }
  0x14   :  { %vm295_vm11 = vcmp.gt.f32.partialorder %v231_v63, 0.0  ;;  %v359_v9 = vmul.f32 0.1, %v231_v63  ;;  %v420_v10 = vsel %vm292_vm8, %v228_v60, %v356_v5  ;;  %v232_v12 = vadd.f32 %v745_v7, %v161_v0 }
  0x15   :  { %v421_v11 = vsel %vm293_vm9, %v229_v61, %v357_v6  ;;  %v233_v13 = vadd.f32 %v745_v7, %v162_v2  ;;  %484 = vst [vmem:[%s1154_s3 + $0x40] sm:$0xff] %v420_v10  ;;  %v422_v15 = vsel %vm294_vm10, %v230_v62, %v358_v8  ;;  %v163_v17 = vmul.f32 %v576_v3, %v731_v1 }
  0x16   :  { %485 = vst [vmem:[%s1154_s3 + $0x48] sm:$0xff] %v421_v11  ;;  %v423_v16 = vsel %vm295_vm11, %v231_v63, %v359_v9  ;;  %v164_v18 = vmul.f32 %v577_v4, %v731_v1  ;;  %486 = vst [vmem:[%s1154_s3 + $0x50] sm:$0xff] %v422_v15  ;;  %vm296_vm12 = vcmp.gt.f32.partialorder %v232_v12, 0.0  ;;  %v360_v20 = vmul.f32 0.1, %v232_v12  ;;  %v686_v63 = vld [vmem:[%s1151_s0 + $0x68] sm:$0xff]  }
  0x17   :  { %487 = vst [vmem:[%s1154_s3 + $0x58] sm:$0xff] %v423_v16  ;;  %vm297_vm13 = vcmp.gt.f32.partialorder %v233_v13, 0.0  ;;  %v361_v21 = vmul.f32 0.1, %v233_v13  ;;  %v234_v22 = vadd.f32 %v745_v7, %v163_v17  ;;  %v580_v24 = vunpack.c.l.bf16 %v681_v14 }
  0x18   :  { %v235_v23 = vadd.f32 %v745_v7, %v164_v18  ;;  %v581_v25 = vunpack.c.h.bf16 %v681_v14  ;;  %v424_v26 = vsel %vm296_vm12, %v232_v12, %v360_v20  ;;  %v584_v28 = vunpack.c.l.bf16 %v682_v19  ;;  %v687_v12 = vld [vmem:[%s1151_s0 + $0x70] sm:$0xff]  }
  0x19   :  { %v425_v27 = vsel %vm297_vm13, %v233_v13, %v361_v21  ;;  %v585_v29 = vunpack.c.h.bf16 %v682_v19  ;;  %488 = vst [vmem:[%s1154_s3 + $0x60] sm:$0xff] %v424_v26  ;;  %vm298_vm14 = vcmp.gt.f32.partialorder %v234_v22, 0.0  ;;  %v362_v31 = vmul.f32 0.1, %v234_v22  ;;  %v688_v19 = vld [vmem:[%s1151_s0 + $0x78] sm:$0xff]  }
  0x1a   :  { %489 = vst [vmem:[%s1154_s3 + $0x68] sm:$0xff] %v425_v27  ;;  %vm299_vm15 = vcmp.gt.f32.partialorder %v235_v23, 0.0  ;;  %v363_v32 = vmul.f32 0.1, %v235_v23  ;;  %v165_v33 = vmul.f32 %v580_v24, %v731_v1  ;;  %v166_v34 = vmul.f32 %v581_v25, %v731_v1 }
  0x1b   :  { %v167_v35 = vmul.f32 %v584_v28, %v731_v1  ;;  %v168_v36 = vmul.f32 %v585_v29, %v731_v1  ;;  %v426_v38 = vsel %vm298_vm14, %v234_v22, %v362_v31  ;;  %v588_v40 = vunpack.c.l.bf16 %v683_v30 }
  0x1c   :  { %v427_v39 = vsel %vm299_vm15, %v235_v23, %v363_v32  ;;  %v589_v41 = vunpack.c.h.bf16 %v683_v30  ;;  %490 = vst [vmem:[%s1154_s3 + $0x70] sm:$0xff] %v426_v38  ;;  %v236_v42 = vadd.f32 %v745_v7, %v165_v33  ;;  %v237_v43 = vadd.f32 %v745_v7, %v166_v34 }
  0x1d   :  { %491 = vst [vmem:[%s1154_s3 + $0x78] sm:$0xff] %v427_v39  ;;  %v238_v44 = vadd.f32 %v745_v7, %v167_v35  ;;  %v239_v45 = vadd.f32 %v745_v7, %v168_v36  ;;  %v169_v46 = vmul.f32 %v588_v40, %v731_v1  ;;  %v592_v48 = vunpack.c.l.bf16 %v684_v37  ;;  %v689_v40 = vld [vmem:[%s1151_s0 + $0x80] sm:$0xff]  }
  0x1e   :  { %v170_v47 = vmul.f32 %v589_v41, %v731_v1  ;;  %v593_v49 = vunpack.c.h.bf16 %v684_v37  ;;  %vm300_vm0 = vcmp.gt.f32.partialorder %v236_v42, 0.0  ;;  %v364_v50 = vmul.f32 0.1, %v236_v42 }
  0x1f   :  { %vm301_vm1 = vcmp.gt.f32.partialorder %v237_v43, 0.0  ;;  %v365_v51 = vmul.f32 0.1, %v237_v43  ;;  %vm302_vm2 = vcmp.gt.f32.partialorder %v238_v44, 0.0  ;;  %v366_v52 = vmul.f32 0.1, %v238_v44 }
  0x20   :  { %vm303_vm3 = vcmp.gt.f32.partialorder %v239_v45, 0.0  ;;  %v367_v53 = vmul.f32 0.1, %v239_v45  ;;  %v428_v54 = vsel %vm300_vm0, %v236_v42, %v364_v50  ;;  %v240_v56 = vadd.f32 %v745_v7, %v169_v46 }
  0x21   :  { %v429_v55 = vsel %vm301_vm1, %v237_v43, %v365_v51  ;;  %v241_v57 = vadd.f32 %v745_v7, %v170_v47  ;;  %492 = vst [vmem:[%s1154_s3 + $0x80] sm:$0xff] %v428_v54  ;;  %v430_v59 = vsel %vm302_vm2, %v238_v44, %v366_v52  ;;  %v171_v61 = vmul.f32 %v592_v48, %v731_v1 }
  0x22   :  { %493 = vst [vmem:[%s1154_s3 + $0x88] sm:$0xff] %v429_v55  ;;  %v431_v60 = vsel %vm303_vm3, %v239_v45, %v367_v53  ;;  %v172_v62 = vmul.f32 %v593_v49, %v731_v1  ;;  %494 = vst [vmem:[%s1154_s3 + $0x90] sm:$0xff] %v430_v59  ;;  %vm304_vm4 = vcmp.gt.f32.partialorder %v240_v56, 0.0  ;;  %v368_v0 = vmul.f32 0.1, %v240_v56  ;;  %v690_v45 = vld [vmem:[%s1151_s0 + $0x88] sm:$0xff]  }
  0x23   :  { %495 = vst [vmem:[%s1154_s3 + $0x98] sm:$0xff] %v431_v60  ;;  %vm305_vm5 = vcmp.gt.f32.partialorder %v241_v57, 0.0  ;;  %v369_v2 = vmul.f32 0.1, %v241_v57  ;;  %v242_v3 = vadd.f32 %v745_v7, %v171_v61  ;;  %v596_v5 = vunpack.c.l.bf16 %v685_v58 }
  0x24   :  { %v243_v4 = vadd.f32 %v745_v7, %v172_v62  ;;  %v597_v6 = vunpack.c.h.bf16 %v685_v58  ;;  %v432_v8 = vsel %vm304_vm4, %v240_v56, %v368_v0  ;;  %v600_v10 = vunpack.c.l.bf16 %v686_v63  ;;  %v691_v56 = vld [vmem:[%s1151_s0 + $0x90] sm:$0xff]  }
  0x25   :  { %v433_v9 = vsel %vm305_vm5, %v241_v57, %v369_v2  ;;  %v601_v11 = vunpack.c.h.bf16 %v686_v63  ;;  %496 = vst [vmem:[%s1154_s3 + $0xa0] sm:$0xff] %v432_v8  ;;  %vm306_vm6 = vcmp.gt.f32.partialorder %v242_v3, 0.0  ;;  %v370_v13 = vmul.f32 0.1, %v242_v3  ;;  %v692_v63 = vld [vmem:[%s1151_s0 + $0x98] sm:$0xff]  }
  0x26   :  { %497 = vst [vmem:[%s1154_s3 + $0xa8] sm:$0xff] %v433_v9  ;;  %vm307_vm7 = vcmp.gt.f32.partialorder %v243_v4, 0.0  ;;  %v371_v14 = vmul.f32 0.1, %v243_v4  ;;  %v173_v15 = vmul.f32 %v596_v5, %v731_v1  ;;  %v174_v16 = vmul.f32 %v597_v6, %v731_v1 }
  0x27   :  { %v175_v17 = vmul.f32 %v600_v10, %v731_v1  ;;  %v176_v18 = vmul.f32 %v601_v11, %v731_v1  ;;  %v434_v20 = vsel %vm306_vm6, %v242_v3, %v370_v13  ;;  %v604_v22 = vunpack.c.l.bf16 %v687_v12 }
  0x28   :  { %v435_v21 = vsel %vm307_vm7, %v243_v4, %v371_v14  ;;  %v605_v23 = vunpack.c.h.bf16 %v687_v12  ;;  %498 = vst [vmem:[%s1154_s3 + $0xb0] sm:$0xff] %v434_v20  ;;  %v244_v24 = vadd.f32 %v745_v7, %v173_v15  ;;  %v245_v25 = vadd.f32 %v745_v7, %v174_v16 }
  0x29   :  { %499 = vst [vmem:[%s1154_s3 + $0xb8] sm:$0xff] %v435_v21  ;;  %v246_v26 = vadd.f32 %v745_v7, %v175_v17  ;;  %v247_v27 = vadd.f32 %v745_v7, %v176_v18  ;;  %v177_v28 = vmul.f32 %v604_v22, %v731_v1  ;;  %v608_v30 = vunpack.c.l.bf16 %v688_v19  ;;  %v693_v22 = vld [vmem:[%s1151_s0 + $0xa0] sm:$0xff]  }
  0x2a   :  { %v178_v29 = vmul.f32 %v605_v23, %v731_v1  ;;  %v609_v31 = vunpack.c.h.bf16 %v688_v19  ;;  %vm308_vm8 = vcmp.gt.f32.partialorder %v244_v24, 0.0  ;;  %v372_v32 = vmul.f32 0.1, %v244_v24 }
  0x2b   :  { %vm309_vm9 = vcmp.gt.f32.partialorder %v245_v25, 0.0  ;;  %v373_v33 = vmul.f32 0.1, %v245_v25  ;;  %vm310_vm10 = vcmp.gt.f32.partialorder %v246_v26, 0.0  ;;  %v374_v34 = vmul.f32 0.1, %v246_v26 }
  0x2c   :  { %vm311_vm11 = vcmp.gt.f32.partialorder %v247_v27, 0.0  ;;  %v375_v35 = vmul.f32 0.1, %v247_v27  ;;  %v436_v36 = vsel %vm308_vm8, %v244_v24, %v372_v32  ;;  %v248_v38 = vadd.f32 %v745_v7, %v177_v28 }
  0x2d   :  { %v437_v37 = vsel %vm309_vm9, %v245_v25, %v373_v33  ;;  %v249_v39 = vadd.f32 %v745_v7, %v178_v29  ;;  %500 = vst [vmem:[%s1154_s3 + $0xc0] sm:$0xff] %v436_v36  ;;  %v438_v41 = vsel %vm310_vm10, %v246_v26, %v374_v34  ;;  %v179_v43 = vmul.f32 %v608_v30, %v731_v1 }
  0x2e   :  { %501 = vst [vmem:[%s1154_s3 + $0xc8] sm:$0xff] %v437_v37  ;;  %v439_v42 = vsel %vm311_vm11, %v247_v27, %v375_v35  ;;  %v180_v44 = vmul.f32 %v609_v31, %v731_v1  ;;  %502 = vst [vmem:[%s1154_s3 + $0xd0] sm:$0xff] %v438_v41  ;;  %vm312_vm12 = vcmp.gt.f32.partialorder %v248_v38, 0.0  ;;  %v376_v46 = vmul.f32 0.1, %v248_v38  ;;  %v694_v27 = vld [vmem:[%s1151_s0 + $0xa8] sm:$0xff]  }
  0x2f   :  { %503 = vst [vmem:[%s1154_s3 + $0xd8] sm:$0xff] %v439_v42  ;;  %vm313_vm13 = vcmp.gt.f32.partialorder %v249_v39, 0.0  ;;  %v377_v47 = vmul.f32 0.1, %v249_v39  ;;  %v250_v48 = vadd.f32 %v745_v7, %v179_v43  ;;  %v612_v50 = vunpack.c.l.bf16 %v689_v40 }
  0x30   :  { %v251_v49 = vadd.f32 %v745_v7, %v180_v44  ;;  %v613_v51 = vunpack.c.h.bf16 %v689_v40  ;;  %v440_v52 = vsel %vm312_vm12, %v248_v38, %v376_v46  ;;  %v616_v54 = vunpack.c.l.bf16 %v690_v45  ;;  %v695_v38 = vld [vmem:[%s1151_s0 + $0xb0] sm:$0xff]  }
  0x31   :  { %v441_v53 = vsel %vm313_vm13, %v249_v39, %v377_v47  ;;  %v617_v55 = vunpack.c.h.bf16 %v690_v45  ;;  %504 = vst [vmem:[%s1154_s3 + $0xe0] sm:$0xff] %v440_v52  ;;  %vm314_vm14 = vcmp.gt.f32.partialorder %v250_v48, 0.0  ;;  %v378_v57 = vmul.f32 0.1, %v250_v48  ;;  %v696_v45 = vld [vmem:[%s1151_s0 + $0xb8] sm:$0xff]  }
  0x32   :  { %505 = vst [vmem:[%s1154_s3 + $0xe8] sm:$0xff] %v441_v53  ;;  %vm315_vm15 = vcmp.gt.f32.partialorder %v251_v49, 0.0  ;;  %v379_v58 = vmul.f32 0.1, %v251_v49  ;;  %v181_v59 = vmul.f32 %v612_v50, %v731_v1  ;;  %v182_v60 = vmul.f32 %v613_v51, %v731_v1 }
  0x33   :  { %v183_v61 = vmul.f32 %v616_v54, %v731_v1  ;;  %v184_v62 = vmul.f32 %v617_v55, %v731_v1  ;;  %v442_v0 = vsel %vm314_vm14, %v250_v48, %v378_v57  ;;  %v620_v3 = vunpack.c.l.bf16 %v691_v56 }
  0x34   :  { %v443_v2 = vsel %vm315_vm15, %v251_v49, %v379_v58  ;;  %v621_v4 = vunpack.c.h.bf16 %v691_v56  ;;  %506 = vst [vmem:[%s1154_s3 + $0xf0] sm:$0xff] %v442_v0  ;;  %v252_v5 = vadd.f32 %v745_v7, %v181_v59  ;;  %v253_v6 = vadd.f32 %v745_v7, %v182_v60 }
  0x35   :  { %507 = vst [vmem:[%s1154_s3 + $0xf8] sm:$0xff] %v443_v2  ;;  %v254_v8 = vadd.f32 %v745_v7, %v183_v61  ;;  %v255_v9 = vadd.f32 %v745_v7, %v184_v62  ;;  %v185_v10 = vmul.f32 %v620_v3, %v731_v1  ;;  %v624_v12 = vunpack.c.l.bf16 %v692_v63  ;;  %v697_v3 = vld [vmem:[%s1151_s0 + $0xc0] sm:$0xff]  }
  0x36   :  { %v186_v11 = vmul.f32 %v621_v4, %v731_v1  ;;  %v625_v13 = vunpack.c.h.bf16 %v692_v63  ;;  %vm316_vm0 = vcmp.gt.f32.partialorder %v252_v5, 0.0  ;;  %v380_v14 = vmul.f32 0.1, %v252_v5 }
  0x37   :  { %vm317_vm1 = vcmp.gt.f32.partialorder %v253_v6, 0.0  ;;  %v381_v15 = vmul.f32 0.1, %v253_v6  ;;  %vm318_vm2 = vcmp.gt.f32.partialorder %v254_v8, 0.0  ;;  %v382_v16 = vmul.f32 0.1, %v254_v8 }
  0x38   :  { %vm319_vm3 = vcmp.gt.f32.partialorder %v255_v9, 0.0  ;;  %v383_v17 = vmul.f32 0.1, %v255_v9  ;;  %v444_v18 = vsel %vm316_vm0, %v252_v5, %v380_v14  ;;  %v256_v20 = vadd.f32 %v745_v7, %v185_v10 }
  0x39   :  { %v445_v19 = vsel %vm317_vm1, %v253_v6, %v381_v15  ;;  %v257_v21 = vadd.f32 %v745_v7, %v186_v11  ;;  %508 = vst [vmem:[%s1154_s3 + $0x100] sm:$0xff] %v444_v18  ;;  %v446_v23 = vsel %vm318_vm2, %v254_v8, %v382_v16  ;;  %v187_v25 = vmul.f32 %v624_v12, %v731_v1 }
  0x3a   :  { %509 = vst [vmem:[%s1154_s3 + $0x108] sm:$0xff] %v445_v19  ;;  %v447_v24 = vsel %vm319_vm3, %v255_v9, %v383_v17  ;;  %v188_v26 = vmul.f32 %v625_v13, %v731_v1  ;;  %510 = vst [vmem:[%s1154_s3 + $0x110] sm:$0xff] %v446_v23  ;;  %vm320_vm4 = vcmp.gt.f32.partialorder %v256_v20, 0.0  ;;  %v384_v28 = vmul.f32 0.1, %v256_v20  ;;  %v698_v9 = vld [vmem:[%s1151_s0 + $0xc8] sm:$0xff]  }
  0x3b   :  { %511 = vst [vmem:[%s1154_s3 + $0x118] sm:$0xff] %v447_v24  ;;  %vm321_vm5 = vcmp.gt.f32.partialorder %v257_v21, 0.0  ;;  %v385_v29 = vmul.f32 0.1, %v257_v21  ;;  %v258_v30 = vadd.f32 %v745_v7, %v187_v25  ;;  %v628_v32 = vunpack.c.l.bf16 %v693_v22 }
  0x3c   :  { %v259_v31 = vadd.f32 %v745_v7, %v188_v26  ;;  %v629_v33 = vunpack.c.h.bf16 %v693_v22  ;;  %v448_v34 = vsel %vm320_vm4, %v256_v20, %v384_v28  ;;  %v632_v36 = vunpack.c.l.bf16 %v694_v27  ;;  %v699_v20 = vld [vmem:[%s1151_s0 + $0xd0] sm:$0xff]  }
  0x3d   :  { %v449_v35 = vsel %vm321_vm5, %v257_v21, %v385_v29  ;;  %v633_v37 = vunpack.c.h.bf16 %v694_v27  ;;  %512 = vst [vmem:[%s1154_s3 + $0x120] sm:$0xff] %v448_v34  ;;  %vm322_vm6 = vcmp.gt.f32.partialorder %v258_v30, 0.0  ;;  %v386_v39 = vmul.f32 0.1, %v258_v30  ;;  %v700_v27 = vld [vmem:[%s1151_s0 + $0xd8] sm:$0xff]  }
  0x3e   :  { %513 = vst [vmem:[%s1154_s3 + $0x128] sm:$0xff] %v449_v35  ;;  %vm323_vm7 = vcmp.gt.f32.partialorder %v259_v31, 0.0  ;;  %v387_v40 = vmul.f32 0.1, %v259_v31  ;;  %v189_v41 = vmul.f32 %v628_v32, %v731_v1  ;;  %v190_v42 = vmul.f32 %v629_v33, %v731_v1 }
  0x3f   :  { %v191_v43 = vmul.f32 %v632_v36, %v731_v1  ;;  %v192_v44 = vmul.f32 %v633_v37, %v731_v1  ;;  %v450_v46 = vsel %vm322_vm6, %v258_v30, %v386_v39  ;;  %v636_v48 = vunpack.c.l.bf16 %v695_v38 }
  0x40   :  { %v451_v47 = vsel %vm323_vm7, %v259_v31, %v387_v40  ;;  %v637_v49 = vunpack.c.h.bf16 %v695_v38  ;;  %514 = vst [vmem:[%s1154_s3 + $0x130] sm:$0xff] %v450_v46  ;;  %v260_v50 = vadd.f32 %v745_v7, %v189_v41  ;;  %v261_v51 = vadd.f32 %v745_v7, %v190_v42 }
  0x41   :  { %515 = vst [vmem:[%s1154_s3 + $0x138] sm:$0xff] %v451_v47  ;;  %v262_v52 = vadd.f32 %v745_v7, %v191_v43  ;;  %v263_v53 = vadd.f32 %v745_v7, %v192_v44  ;;  %v193_v54 = vmul.f32 %v636_v48, %v731_v1  ;;  %v640_v56 = vunpack.c.l.bf16 %v696_v45  ;;  %v701_v48 = vld [vmem:[%s1151_s0 + $0xe0] sm:$0xff]  }
  0x42   :  { %v194_v55 = vmul.f32 %v637_v49, %v731_v1  ;;  %v641_v57 = vunpack.c.h.bf16 %v696_v45  ;;  %vm324_vm8 = vcmp.gt.f32.partialorder %v260_v50, 0.0  ;;  %v388_v58 = vmul.f32 0.1, %v260_v50 }
  0x43   :  { %vm325_vm9 = vcmp.gt.f32.partialorder %v261_v51, 0.0  ;;  %v389_v59 = vmul.f32 0.1, %v261_v51  ;;  %vm326_vm10 = vcmp.gt.f32.partialorder %v262_v52, 0.0  ;;  %v390_v60 = vmul.f32 0.1, %v262_v52 }
  0x44   :  { %vm327_vm11 = vcmp.gt.f32.partialorder %v263_v53, 0.0  ;;  %v391_v61 = vmul.f32 0.1, %v263_v53  ;;  %v452_v62 = vsel %vm324_vm8, %v260_v50, %v388_v58  ;;  %v264_v0 = vadd.f32 %v745_v7, %v193_v54 }
  0x45   :  { %v453_v63 = vsel %vm325_vm9, %v261_v51, %v389_v59  ;;  %v265_v2 = vadd.f32 %v745_v7, %v194_v55  ;;  %516 = vst [vmem:[%s1154_s3 + $0x140] sm:$0xff] %v452_v62  ;;  %v454_v4 = vsel %vm326_vm10, %v262_v52, %v390_v60  ;;  %v195_v6 = vmul.f32 %v640_v56, %v731_v1 }
  0x46   :  { %517 = vst [vmem:[%s1154_s3 + $0x148] sm:$0xff] %v453_v63  ;;  %v455_v5 = vsel %vm327_vm11, %v263_v53, %v391_v61  ;;  %v196_v8 = vmul.f32 %v641_v57, %v731_v1  ;;  %518 = vst [vmem:[%s1154_s3 + $0x150] sm:$0xff] %v454_v4  ;;  %vm328_vm12 = vcmp.gt.f32.partialorder %v264_v0, 0.0  ;;  %v392_v10 = vmul.f32 0.1, %v264_v0  ;;  %v702_v53 = vld [vmem:[%s1151_s0 + $0xe8] sm:$0xff]  }
  0x47   :  { %519 = vst [vmem:[%s1154_s3 + $0x158] sm:$0xff] %v455_v5  ;;  %vm329_vm13 = vcmp.gt.f32.partialorder %v265_v2, 0.0  ;;  %v393_v11 = vmul.f32 0.1, %v265_v2  ;;  %v266_v12 = vadd.f32 %v745_v7, %v195_v6  ;;  %v644_v14 = vunpack.c.l.bf16 %v697_v3 }
  0x48   :  { %v267_v13 = vadd.f32 %v745_v7, %v196_v8  ;;  %v645_v15 = vunpack.c.h.bf16 %v697_v3  ;;  %v456_v16 = vsel %vm328_vm12, %v264_v0, %v392_v10  ;;  %v648_v18 = vunpack.c.l.bf16 %v698_v9  ;;  %v703_v0 = vld [vmem:[%s1151_s0 + $0xf0] sm:$0xff]  }
  0x49   :  { %v457_v17 = vsel %vm329_vm13, %v265_v2, %v393_v11  ;;  %v649_v19 = vunpack.c.h.bf16 %v698_v9  ;;  %520 = vst [vmem:[%s1154_s3 + $0x160] sm:$0xff] %v456_v16  ;;  %vm330_vm14 = vcmp.gt.f32.partialorder %v266_v12, 0.0  ;;  %v394_v21 = vmul.f32 0.1, %v266_v12  ;;  %v704_v9 = vld [vmem:[%s1151_s0 + $0xf8] sm:$0xff]  }
  0x4a   :  { %521 = vst [vmem:[%s1154_s3 + $0x168] sm:$0xff] %v457_v17  ;;  %vm331_vm15 = vcmp.gt.f32.partialorder %v267_v13, 0.0  ;;  %v395_v22 = vmul.f32 0.1, %v267_v13  ;;  %v197_v23 = vmul.f32 %v644_v14, %v731_v1  ;;  %v198_v24 = vmul.f32 %v645_v15, %v731_v1 }
  0x4b   :  { %v199_v25 = vmul.f32 %v648_v18, %v731_v1  ;;  %v200_v26 = vmul.f32 %v649_v19, %v731_v1  ;;  %v458_v28 = vsel %vm330_vm14, %v266_v12, %v394_v21  ;;  %v652_v30 = vunpack.c.l.bf16 %v699_v20 }
  0x4c   :  { %v459_v29 = vsel %vm331_vm15, %v267_v13, %v395_v22  ;;  %v653_v31 = vunpack.c.h.bf16 %v699_v20  ;;  %522 = vst [vmem:[%s1154_s3 + $0x170] sm:$0xff] %v458_v28  ;;  %v268_v32 = vadd.f32 %v745_v7, %v197_v23  ;;  %v269_v33 = vadd.f32 %v745_v7, %v198_v24 }
  0x4d   :  { %523 = vst [vmem:[%s1154_s3 + $0x178] sm:$0xff] %v459_v29  ;;  %v270_v34 = vadd.f32 %v745_v7, %v199_v25  ;;  %v271_v35 = vadd.f32 %v745_v7, %v200_v26  ;;  %v201_v36 = vmul.f32 %v652_v30, %v731_v1  ;;  %v656_v38 = vunpack.c.l.bf16 %v700_v27 }
  0x4e   :  { %v202_v37 = vmul.f32 %v653_v31, %v731_v1  ;;  %v657_v39 = vunpack.c.h.bf16 %v700_v27  ;;  %vm332_vm0 = vcmp.gt.f32.partialorder %v268_v32, 0.0  ;;  %v396_v40 = vmul.f32 0.1, %v268_v32 }
  0x4f   :  { %vm333_vm1 = vcmp.gt.f32.partialorder %v269_v33, 0.0  ;;  %v397_v41 = vmul.f32 0.1, %v269_v33  ;;  %vm334_vm2 = vcmp.gt.f32.partialorder %v270_v34, 0.0  ;;  %v398_v42 = vmul.f32 0.1, %v270_v34 }
  0x50   :  { %vm335_vm3 = vcmp.gt.f32.partialorder %v271_v35, 0.0  ;;  %v399_v43 = vmul.f32 0.1, %v271_v35  ;;  %v460_v44 = vsel %vm332_vm0, %v268_v32, %v396_v40  ;;  %v272_v46 = vadd.f32 %v745_v7, %v201_v36 }
  0x51   :  { %v461_v45 = vsel %vm333_vm1, %v269_v33, %v397_v41  ;;  %v273_v47 = vadd.f32 %v745_v7, %v202_v37  ;;  %524 = vst [vmem:[%s1154_s3 + $0x180] sm:$0xff] %v460_v44  ;;  %v462_v49 = vsel %vm334_vm2, %v270_v34, %v398_v42  ;;  %v203_v51 = vmul.f32 %v656_v38, %v731_v1 }
  0x52   :  { %525 = vst [vmem:[%s1154_s3 + $0x188] sm:$0xff] %v461_v45  ;;  %v463_v50 = vsel %vm335_vm3, %v271_v35, %v399_v43  ;;  %v204_v52 = vmul.f32 %v657_v39, %v731_v1  ;;  %526 = vst [vmem:[%s1154_s3 + $0x190] sm:$0xff] %v462_v49  ;;  %vm336_vm4 = vcmp.gt.f32.partialorder %v272_v46, 0.0  ;;  %v400_v54 = vmul.f32 0.1, %v272_v46 }
  0x53   :  { %527 = vst [vmem:[%s1154_s3 + $0x198] sm:$0xff] %v463_v50  ;;  %vm337_vm5 = vcmp.gt.f32.partialorder %v273_v47, 0.0  ;;  %v401_v55 = vmul.f32 0.1, %v273_v47  ;;  %v274_v56 = vadd.f32 %v745_v7, %v203_v51  ;;  %v660_v58 = vunpack.c.l.bf16 %v701_v48 }
  0x54   :  { %v275_v57 = vadd.f32 %v745_v7, %v204_v52  ;;  %v661_v59 = vunpack.c.h.bf16 %v701_v48  ;;  %v464_v60 = vsel %vm336_vm4, %v272_v46, %v400_v54  ;;  %v664_v62 = vunpack.c.l.bf16 %v702_v53 }
  0x55   :  { %v465_v61 = vsel %vm337_vm5, %v273_v47, %v401_v55  ;;  %v665_v63 = vunpack.c.h.bf16 %v702_v53  ;;  %528 = vst [vmem:[%s1154_s3 + $0x1a0] sm:$0xff] %v464_v60  ;;  %vm338_vm6 = vcmp.gt.f32.partialorder %v274_v56, 0.0  ;;  %v402_v2 = vmul.f32 0.1, %v274_v56 }
  0x56   :  { %529 = vst [vmem:[%s1154_s3 + $0x1a8] sm:$0xff] %v465_v61  ;;  %vm339_vm7 = vcmp.gt.f32.partialorder %v275_v57, 0.0  ;;  %v403_v3 = vmul.f32 0.1, %v275_v57  ;;  %v205_v4 = vmul.f32 %v660_v58, %v731_v1  ;;  %v206_v5 = vmul.f32 %v661_v59, %v731_v1 }
  0x57   :  { %v207_v6 = vmul.f32 %v664_v62, %v731_v1  ;;  %v208_v8 = vmul.f32 %v665_v63, %v731_v1  ;;  %v466_v10 = vsel %vm338_vm6, %v274_v56, %v402_v2  ;;  %v668_v12 = vunpack.c.l.bf16 %v703_v0 }
  0x58   :  { %v467_v11 = vsel %vm339_vm7, %v275_v57, %v403_v3  ;;  %v669_v13 = vunpack.c.h.bf16 %v703_v0  ;;  %530 = vst [vmem:[%s1154_s3 + $0x1b0] sm:$0xff] %v466_v10  ;;  %v276_v14 = vadd.f32 %v745_v7, %v205_v4  ;;  %v277_v15 = vadd.f32 %v745_v7, %v206_v5 }
  0x59   :  { %531 = vst [vmem:[%s1154_s3 + $0x1b8] sm:$0xff] %v467_v11  ;;  %v278_v16 = vadd.f32 %v745_v7, %v207_v6  ;;  %v279_v17 = vadd.f32 %v745_v7, %v208_v8  ;;  %v209_v18 = vmul.f32 %v668_v12, %v731_v1  ;;  %v672_v20 = vunpack.c.l.bf16 %v704_v9 }
  0x5a   :  { %v210_v19 = vmul.f32 %v669_v13, %v731_v1  ;;  %v673_v21 = vunpack.c.h.bf16 %v704_v9  ;;  %vm340_vm8 = vcmp.gt.f32.partialorder %v276_v14, 0.0  ;;  %v404_v22 = vmul.f32 0.1, %v276_v14 }
  0x5b   :  { %vm341_vm9 = vcmp.gt.f32.partialorder %v277_v15, 0.0  ;;  %v405_v23 = vmul.f32 0.1, %v277_v15  ;;  %vm342_vm10 = vcmp.gt.f32.partialorder %v278_v16, 0.0  ;;  %v406_v24 = vmul.f32 0.1, %v278_v16 }
  0x5c   :  { %vm343_vm11 = vcmp.gt.f32.partialorder %v279_v17, 0.0  ;;  %v407_v25 = vmul.f32 0.1, %v279_v17  ;;  %v468_v26 = vsel %vm340_vm8, %v276_v14, %v404_v22  ;;  %v280_v28 = vadd.f32 %v745_v7, %v209_v18 }
  0x5d   :  { %v469_v27 = vsel %vm341_vm9, %v277_v15, %v405_v23  ;;  %v281_v29 = vadd.f32 %v745_v7, %v210_v19  ;;  %532 = vst [vmem:[%s1154_s3 + $0x1c0] sm:$0xff] %v468_v26  ;;  %v470_v30 = vsel %vm342_vm10, %v278_v16, %v406_v24  ;;  %v211_v32 = vmul.f32 %v672_v20, %v731_v1 }
  0x5e   :  { %533 = vst [vmem:[%s1154_s3 + $0x1c8] sm:$0xff] %v469_v27  ;;  %v471_v31 = vsel %vm343_vm11, %v279_v17, %v407_v25  ;;  %v212_v33 = vmul.f32 %v673_v21, %v731_v1  ;;  %534 = vst [vmem:[%s1154_s3 + $0x1d0] sm:$0xff] %v470_v30  ;;  %vm344_vm12 = vcmp.gt.f32.partialorder %v280_v28, 0.0  ;;  %v408_v34 = vmul.f32 0.1, %v280_v28 }
  0x5f   :  { %535 = vst [vmem:[%s1154_s3 + $0x1d8] sm:$0xff] %v471_v31  ;;  %vm345_vm13 = vcmp.gt.f32.partialorder %v281_v29, 0.0  ;;  %v409_v35 = vmul.f32 0.1, %v281_v29  ;;  %v282_v36 = vadd.f32 %v745_v7, %v211_v32 }
  0x60   :  { %v283_v37 = vadd.f32 %v745_v7, %v212_v33  ;;  %v472_v38 = vsel %vm344_vm12, %v280_v28, %v408_v34 }
  0x61   :  { %v473_v39 = vsel %vm345_vm13, %v281_v29, %v409_v35  ;;  %536 = vst [vmem:[%s1154_s3 + $0x1e0] sm:$0xff] %v472_v38  ;;  %vm346_vm14 = vcmp.gt.f32.partialorder %v282_v36, 0.0  ;;  %v410_v1 = vmul.f32 0.1, %v282_v36 }
  0x62   :  { %537 = vst [vmem:[%s1154_s3 + $0x1e8] sm:$0xff] %v473_v39  ;;  %vm347_vm15 = vcmp.gt.f32.partialorder %v283_v37, 0.0  ;;  %v411_v40 = vmul.f32 0.1, %v283_v37 }
  0x63   :  { %v474_v41 = vsel %vm346_vm14, %v282_v36, %v410_v1 }
  0x64   :  { %v475_v42 = vsel %vm347_vm15, %v283_v37, %v411_v40  ;;  %538 = vst [vmem:[%s1154_s3 + $0x1f0] sm:$0xff] %v474_v41 }
  0x65   :  { %539 = vst [vmem:[%s1154_s3 + $0x1f8] sm:$0xff] %v475_v42 }

// kernel: cnn_block_forward.2
= control target key start
LH: loop header
LB: loop body
LE: loop exit
PB: predicated region body
PF: predicated region fallthrough
CT: control target
= control target key end

     0   :  { %s1360_s12 = smov 0   ;;  %s1362_s13 = smov 0   ;;  %s1558_s0 = inlined_call_operand.vmem [shape: bf16[512,128], index: 0, kind: input, shape index: {}]   ;;  %s1559_s1 = inlined_call_operand.vmem [shape: bf16[128,128], index: 1, kind: input, shape index: {}]   ;;  %s1560_s2 = inlined_call_operand.vmem [shape: bf16[512,128], index: 2, kind: output, shape index: {0}]   ;;  %s1561_s3 = inlined_call_operand.vmem [shape: f32[2,2,128], index: 3, kind: output, shape index: {1}]  }
   0x1   :  { %s1364_s14 = smov 0  }
   0x2 LB: > { %s26_s15 = sadd.s32 1, %s1334_s13  ;;  %p989_p0 = scmp.ge.s32.totalorder %s1338_s14, 1  ;;  %s1338_s14 = sphi %s1364_s14, %s14_s14   ;;  %s1334_s13 = sphi %s1362_s13, %s1563_s13   ;;  %s1330_s12 = sphi %s1360_s12, %s1562_s12  }
   0x3   : > { %p28_p1 = scmp.ge.s32.totalorder %s26_s15, 2  ;;  %p166_p2 = scmp.lt.s32.totalorder %s1338_s14, 3 }
   0x5   : > { %s1565_s15 = smov (%p28_p1, %s26_s15), 0  ;;  %p167_p3 = pnand %p989_p0, %p166_p2 }
   0x6   : > { %s990_s18 = sshll.u32 (!%p167_p3), %s1330_s12, 5  ;;  %p223_p5 = scmp.lt.s32.totalorder (!%p167_p3), %s1330_s12, 1 }
   0x7   : > { %170 = sbr.rel (%p167_p3) target bundleno = 322 (0x142), region = 28  ;;  %p205_p4 = scmp.lt.s32.totalorder (!%p167_p3), %s990_s18, 63 }
   0xc   : > { %v1292_v0 = vld [vmem:[%s1559_s1 + $0x38] sm:$0xff]   ;;  %v1293_v1 = vld [vmem:[%s1559_s1 + $0x30] sm:$0xff]   ;;  %s1567_s18 = smov (!%p205_p4, %s990_s18), 63  ;;  %v1294_v2 = vld [vmem:[%s1559_s1 + $0x28] sm:$0xff]   ;;  %s1569_s12 = smov (!%p223_p5, %s1330_s12), 1  ;;  %vm690_vm0 = vcmask 1040384  }
   0xd   : > { %1204 = vmatprep.subr.bf16.mxu0 %v1292_v0  ;;  %1252 = vmatprep.subr.bf16.mxu1 %v1292_v0  ;;  %s991_s23 = sshll.u32 %s1567_s18, 2  ;;  %v1295_v3 = vld [vmem:[%s1559_s1 + $0x20] sm:$0xff]   ;;  %v1296_v5 = vld [vmem:[%s1559_s1 + $0x18] sm:$0xff]   ;;  %v1297_v6 = vld [vmem:[%s1559_s1 + $0x10] sm:$0xff]   ;;  %s994_s17 = sshll.u32 %s1569_s12, 1 }
   0xe   : > { %1205 = vmatpush3.bf16.msra.mxu0 %v1292_v0  ;;  %1260 = vmatpush3.bf16.msra.mxu1 %v1292_v0  ;;  %s1398_s26 = scalar_lea.vmem %s1558_s0, %s991_s23  ;;  %v1298_v8 = vld [vmem:[%s1559_s1 + $0x8] sm:$0xff]   ;;  %v1299_v9 = vld [vmem:[%s1559_s1] sm:$0xff]   ;;  %s1440_s16 = scalar_lea.vmem %s1560_s2, %s991_s23 }
   0xf   : > { %1206 = vmatprep.subr.bf16.mxu0 %v1293_v1  ;;  %1253 = vmatprep.subr.bf16.mxu1 %v1293_v1  ;;  %v1300_v4 = vld [vmem:[%s1398_s26] sm:$0xff]   ;;  %v1301_v10 = vld [vmem:[%s1398_s26 + $0x8] sm:$0xff]   ;;  %v1302_v12 = vld [vmem:[%s1398_s26 + $0x10] sm:$0xff]   ;;  %s229_s20 = scalar_lea.vmem %s1561_s3, %s994_s17 }
  0x10   : > { %1220 = vmatprep.mubr.bf16.mxu0 %v1300_v4  ;;  %v1308_v7 = vld [vmem:[%s1398_s26 + $0x40] sm:$0xff]   ;;  %v1309_v11 = vld [vmem:[%s1398_s26 + $0x48] sm:$0xff]   ;;  %v1310_v13 = vld [vmem:[%s1398_s26 + $0x50] sm:$0xff]  }
  0x11   : > { %1236 = vmatprep.mubr.bf16.mxu1 %v1308_v7  ;;  %v1303_v14 = vld [vmem:[%s1398_s26 + $0x18] sm:$0xff]   ;;  %v1304_v16 = vld [vmem:[%s1398_s26 + $0x20] sm:$0xff]   ;;  %v1305_v18 = vld [vmem:[%s1398_s26 + $0x28] sm:$0xff]  }
  0x12   : > { %1207 = vmatpush3.bf16.msra.mxu0 %v1293_v1  ;;  %1261 = vmatpush3.bf16.msra.mxu1 %v1293_v1  ;;  %v1311_v15 = vld [vmem:[%s1398_s26 + $0x58] sm:$0xff]   ;;  %v1312_v17 = vld [vmem:[%s1398_s26 + $0x60] sm:$0xff]   ;;  %v1313_v19 = vld [vmem:[%s1398_s26 + $0x68] sm:$0xff]  }
  0x13   : > { %1208 = vmatprep.subr.bf16.mxu0 %v1294_v2  ;;  %1254 = vmatprep.subr.bf16.mxu1 %v1294_v2  ;;  %v1306_v20 = vld [vmem:[%s1398_s26 + $0x30] sm:$0xff]   ;;  %v1307_v22 = vld [vmem:[%s1398_s26 + $0x38] sm:$0xff]  }
  0x14   : > { %v1314_v21 = vld [vmem:[%s1398_s26 + $0x70] sm:$0xff]   ;;  %v1315_v23 = vld [vmem:[%s1398_s26 + $0x78] sm:$0xff]  }
  0x16   : > { %1209 = vmatpush3.bf16.msra.mxu0 %v1294_v2  ;;  %1262 = vmatpush3.bf16.msra.mxu1 %v1294_v2 }
  0x17   : > { %1210 = vmatprep.subr.bf16.mxu0 %v1295_v3  ;;  %1255 = vmatprep.subr.bf16.mxu1 %v1295_v3 }
  0x1a   : > { %1211 = vmatpush3.bf16.msra.mxu0 %v1295_v3  ;;  %1263 = vmatpush3.bf16.msra.mxu1 %v1295_v3 }
  0x1b   : > { %1212 = vmatprep.subr.bf16.mxu0 %v1296_v5  ;;  %1256 = vmatprep.subr.bf16.mxu1 %v1296_v5 }
  0x1e   : > { %1213 = vmatpush3.bf16.msra.mxu0 %v1296_v5  ;;  %1264 = vmatpush3.bf16.msra.mxu1 %v1296_v5 }
  0x1f   : > { %1214 = vmatprep.subr.bf16.mxu0 %v1297_v6  ;;  %1257 = vmatprep.subr.bf16.mxu1 %v1297_v6 }
  0x22   : > { %1215 = vmatpush3.bf16.msra.mxu0 %v1297_v6  ;;  %1265 = vmatpush3.bf16.msra.mxu1 %v1297_v6 }
  0x23   : > { %1216 = vmatprep.subr.bf16.mxu0 %v1298_v8  ;;  %1258 = vmatprep.subr.bf16.mxu1 %v1298_v8 }
  0x26   : > { %1217 = vmatpush3.bf16.msra.mxu0 %v1298_v8  ;;  %1266 = vmatpush3.bf16.msra.mxu1 %v1298_v8 }
  0x27   : > { %1218 = vmatprep.subr.bf16.mxu0 %v1299_v9  ;;  %1259 = vmatprep.subr.bf16.mxu1 %v1299_v9 }
  0x2a   : > { %1219 = vmatpush3.bf16.msra.mxu0 %v1299_v9  ;;  %1267 = vmatpush3.bf16.msra.mxu1 %v1299_v9 }
  0x2d   : > { %1221 = vmatmul.mubr.bf16.vlgmr.msra.gmra.mxu0 %v1301_v10  ;;  %1237 = vmatmul.mubr.bf16.vlgmr.msra.gmra.mxu1 %v1309_v11 }
  0x2e   : > { %1224 = vmatprep.mubr.bf16.mxu0 %v1302_v12  ;;  %1240 = vmatprep.mubr.bf16.mxu1 %v1310_v13 }
  0x35   : > { %1225 = vmatmul.mubr.bf16.gmra.mxu0 %v1303_v14  ;;  %1241 = vmatmul.mubr.bf16.gmra.mxu1 %v1311_v15 }
  0x36   : > { %1228 = vmatprep.mubr.bf16.mxu0 %v1304_v16  ;;  %1244 = vmatprep.mubr.bf16.mxu1 %v1312_v17 }
  0x3d   : > { %1229 = vmatmul.mubr.bf16.gmra.mxu0 %v1305_v18  ;;  %1245 = vmatmul.mubr.bf16.gmra.mxu1 %v1313_v19 }
  0x3e   : > { %1232 = vmatprep.mubr.bf16.mxu0 %v1306_v20  ;;  %1248 = vmatprep.mubr.bf16.mxu1 %v1314_v21 }
  0x45   : > { %1233 = vmatmul.mubr.bf16.gmra.mxu0 %v1307_v22  ;;  %1249 = vmatmul.mubr.bf16.gmra.mxu1 %v1315_v23 }
  0xed   : > { %v1222_v24 = vpop.f32.mrf.mxu0  ;;  %v1431_v25 = vpop.f32.mrf.mxu1 }
  0xee   : > { %v623_v41 = vmul.f32 %v1222_v24, %v1222_v24 }
  0xef   : > { %v457_v26 = vpop.f32.mrf.mxu0  ;;  %v1433_v27 = vpop.f32.mrf.mxu1 }
  0xf0   : > { %v621_v34 = vmul.f32 %v457_v26, %v457_v26 }
  0xf1   : > { %v1223_v28 = vpop.f32.mrf.mxu0  ;;  %v1442_v29 = vpop.f32.mrf.mxu1 }
  0xf2   : > { %v1093_v30 = vpack.c.bf16 %v1223_v28, %v1222_v24  ;;  %v1133_v31 = vpack.c.bf16 %v1442_v29, %v1431_v25  ;;  %v624_v46 = vmul.f32 %v1223_v28, %v1223_v28 }
  0xf3   : > { %v460_v32 = vpop.f32.mrf.mxu0  ;;  %v1446_v33 = vpop.f32.mrf.mxu1 }
  0xf4   : > { %1165 = vst [vmem:[%s1440_s16 + $0x8] sm:$0xff] %v1093_v30   ;;  %v584_v35 = vadd.f32 %v460_v32, %v457_v26  ;;  %v622_v36 = vmul.f32 %v460_v32, %v460_v32  ;;  %v1088_v37 = vpack.c.bf16 %v460_v32, %v457_v26  ;;  %1173 = vst [vmem:[%s1440_s16 + $0x48] sm:$0xff] %v1133_v31  }
  0xf5   : > { %v1226_v38 = vpop.f32.mrf.mxu0  ;;  %v1128_v39 = vpack.c.bf16 %v1446_v33, %v1433_v27  ;;  %v1452_v40 = vpop.f32.mrf.mxu1 }
  0xf6   : > { %v585_v42 = vadd.f32 %v1222_v24, %v584_v35  ;;  %v653_v43 = vadd.f32 %v622_v36, %v621_v34  ;;  %1089 = vst [vmem:[%s1440_s16] sm:$0xff] %v1088_v37   ;;  %v627_v1 = vmul.f32 %v1226_v38, %v1226_v38 }
  0xf7   : > { %v473_v44 = vpop.f32.mrf.mxu0  ;;  %1172 = vst [vmem:[%s1440_s16 + $0x40] sm:$0xff] %v1128_v39   ;;  %v1456_v45 = vpop.f32.mrf.mxu1 }
  0xf8   : > { %v654_v47 = vadd.f32 %v653_v43, %v623_v41  ;;  %v586_v48 = vadd.f32 %v1223_v28, %v585_v42  ;;  %v625_v52 = vmul.f32 %v473_v44, %v473_v44 }
  0xf9   : > { %v1227_v49 = vpop.f32.mrf.mxu0  ;;  %v1458_v50 = vpop.f32.mrf.mxu1 }
  0xfa   : > { %v587_v51 = vadd.f32 %v586_v48, %v473_v44  ;;  %v655_v53 = vadd.f32 %v654_v47, %v624_v46  ;;  %v1103_v54 = vpack.c.bf16 %v1227_v49, %v1226_v38  ;;  %v1143_v56 = vpack.c.bf16 %v1458_v50, %v1452_v40 }
  0xfb   : > { %v476_v55 = vpop.f32.mrf.mxu0  ;;  %v1462_v57 = vpop.f32.mrf.mxu1  ;;  %v628_v6 = vmul.f32 %v1227_v49, %v1227_v49 }
  0xfc   : > { %v656_v58 = vadd.f32 %v655_v53, %v625_v52  ;;  %1167 = vst [vmem:[%s1440_s16 + $0x18] sm:$0xff] %v1103_v54   ;;  %v588_v59 = vadd.f32 %v587_v51, %v476_v55  ;;  %v626_v60 = vmul.f32 %v476_v55, %v476_v55  ;;  %v1098_v61 = vpack.c.bf16 %v476_v55, %v473_v44 }
  0xfd   : > { %v1230_v62 = vpop.f32.mrf.mxu0  ;;  %1175 = vst [vmem:[%s1440_s16 + $0x58] sm:$0xff] %v1143_v56   ;;  %v1138_v63 = vpack.c.bf16 %v1462_v57, %v1456_v45  ;;  %v1468_v0 = vpop.f32.mrf.mxu1 }
  0xfe   : > { %v589_v2 = vadd.f32 %v1226_v38, %v588_v59  ;;  %v657_v3 = vadd.f32 %v656_v58, %v626_v60  ;;  %1166 = vst [vmem:[%s1440_s16 + $0x10] sm:$0xff] %v1098_v61   ;;  %v631_v26 = vmul.f32 %v1230_v62, %v1230_v62  ;;  %v637_v61 = vmul.f32 %v1433_v27, %v1433_v27 }
  0xff   : > { %v489_v4 = vpop.f32.mrf.mxu0  ;;  %1174 = vst [vmem:[%s1440_s16 + $0x50] sm:$0xff] %v1138_v63   ;;  %v1472_v5 = vpop.f32.mrf.mxu1 }
 0x100   : > { %v658_v7 = vadd.f32 %v657_v3, %v627_v1  ;;  %v590_v8 = vadd.f32 %v1227_v49, %v589_v2  ;;  %v629_v12 = vmul.f32 %v489_v4, %v489_v4  ;;  %v638_v2 = vmul.f32 %v1446_v33, %v1446_v33 }
 0x101   : > { %v1231_v9 = vpop.f32.mrf.mxu0  ;;  %v1474_v10 = vpop.f32.mrf.mxu1 }
 0x102   : > { %v591_v11 = vadd.f32 %v590_v8, %v489_v4  ;;  %v659_v13 = vadd.f32 %v658_v7, %v628_v6  ;;  %v1113_v14 = vpack.c.bf16 %v1231_v9, %v1230_v62  ;;  %v1153_v16 = vpack.c.bf16 %v1474_v10, %v1468_v0 }
 0x103   : > { %v492_v15 = vpop.f32.mrf.mxu0  ;;  %v1478_v17 = vpop.f32.mrf.mxu1  ;;  %v632_v34 = vmul.f32 %v1231_v9, %v1231_v9  ;;  %v640_v8 = vmul.f32 %v1442_v29, %v1442_v29 }
 0x104   : > { %v660_v18 = vadd.f32 %v659_v13, %v629_v12  ;;  %1169 = vst [vmem:[%s1440_s16 + $0x28] sm:$0xff] %v1113_v14   ;;  %v592_v19 = vadd.f32 %v591_v11, %v492_v15  ;;  %v630_v20 = vmul.f32 %v492_v15, %v492_v15  ;;  %v1108_v21 = vpack.c.bf16 %v492_v15, %v489_v4 }
 0x105   : > { %v1234_v22 = vpop.f32.mrf.mxu0  ;;  %1177 = vst [vmem:[%s1440_s16 + $0x68] sm:$0xff] %v1153_v16   ;;  %v1148_v23 = vpack.c.bf16 %v1478_v17, %v1472_v5  ;;  %v1484_v24 = vpop.f32.mrf.mxu1  ;;  %v639_v4 = vmul.f32 %v1431_v25, %v1431_v25  ;;  %v641_v12 = vmul.f32 %v1456_v45, %v1456_v45  ;;  %v642_v15 = vmul.f32 %v1462_v57, %v1462_v57 }
 0x106   : > { %v593_v28 = vadd.f32 %v1230_v62, %v592_v19  ;;  %v661_v30 = vadd.f32 %v660_v18, %v630_v20  ;;  %1168 = vst [vmem:[%s1440_s16 + $0x20] sm:$0xff] %v1108_v21   ;;  %v635_v54 = vmul.f32 %v1234_v22, %v1234_v22  ;;  %v645_v21 = vmul.f32 %v1472_v5, %v1472_v5 }
 0x107   : > { %v505_v31 = vpop.f32.mrf.mxu0  ;;  %1176 = vst [vmem:[%s1440_s16 + $0x60] sm:$0xff] %v1148_v23   ;;  %v1488_v32 = vpop.f32.mrf.mxu1 }
 0x108   : > { %v662_v35 = vadd.f32 %v661_v30, %v631_v26  ;;  %v594_v36 = vadd.f32 %v1231_v9, %v593_v28  ;;  %v633_v41 = vmul.f32 %v505_v31, %v505_v31  ;;  %v646_v26 = vmul.f32 %v1478_v17, %v1478_v17 }
 0x109   : > { %v1235_v37 = vpop.f32.mrf.mxu0  ;;  %v1490_v38 = vpop.f32.mrf.mxu1 }
 0x10a   : > { %v595_v39 = vadd.f32 %v594_v36, %v505_v31  ;;  %v663_v42 = vadd.f32 %v662_v35, %v632_v34  ;;  %v1123_v43 = vpack.c.bf16 %v1235_v37, %v1234_v22  ;;  %v1163_v46 = vpack.c.bf16 %v1490_v38, %v1484_v24 }
 0x10b   : > { %v508_v44 = vpop.f32.mrf.mxu0  ;;  %v572_v47 = vpop.f32.mrf.mxu1  ;;  %v636_v58 = vmul.f32 %v1235_v37, %v1235_v37  ;;  %v649_v35 = vmul.f32 %v1488_v32, %v1488_v32 }
 0x10c   : > { %v664_v48 = vadd.f32 %v663_v42, %v633_v41  ;;  %1171 = vst [vmem:[%s1440_s16 + $0x38] sm:$0xff] %v1123_v43   ;;  %v596_v49 = vadd.f32 %v595_v39, %v508_v44  ;;  %v634_v51 = vmul.f32 %v508_v44, %v508_v44  ;;  %v1118_v52 = vpack.c.bf16 %v508_v44, %v505_v31 }
 0x10d   : > { %1179 = vst [vmem:[%s1440_s16 + $0x78] sm:$0xff] %v1163_v46   ;;  %v1158_v53 = vpack.c.bf16 %v572_v47, %v1488_v32  ;;  %v650_v39 = vmul.f32 %v572_v47, %v572_v47  ;;  %v652_v43 = vmul.f32 %v1490_v38, %v1490_v38 }
 0x10e   : > { %v597_v55 = vadd.f32 %v1234_v22, %v596_v49  ;;  %v665_v56 = vadd.f32 %v664_v48, %v634_v51  ;;  %1170 = vst [vmem:[%s1440_s16 + $0x30] sm:$0xff] %v1118_v52  }
 0x10f   : > { %1178 = vst [vmem:[%s1440_s16 + $0x70] sm:$0xff] %v1158_v53  }
 0x110   : > { %v598_v59 = vadd.f32 %v1235_v37, %v597_v55  ;;  %v666_v60 = vadd.f32 %v665_v56, %v635_v54 }
 0x112   : > { %v667_v62 = vadd.f32 %v666_v60, %v636_v58  ;;  %v599_v63 = vadd.f32 %v598_v59, %v1433_v27 }
 0x114   : > { %v600_v1 = vadd.f32 %v599_v63, %v1446_v33  ;;  %v668_v3 = vadd.f32 %v667_v62, %v637_v61 }
 0x116   : > { %v601_v6 = vadd.f32 %v1431_v25, %v600_v1  ;;  %v669_v7 = vadd.f32 %v668_v3, %v638_v2  ;;  %v643_v25 = vmul.f32 %v1452_v40, %v1452_v40 }
 0x118   : > { %v670_v9 = vadd.f32 %v669_v7, %v639_v4  ;;  %v602_v11 = vadd.f32 %v1442_v29, %v601_v6  ;;  %v644_v29 = vmul.f32 %v1458_v50, %v1458_v50 }
 0x11a   : > { %v603_v27 = vadd.f32 %v602_v11, %v1456_v45  ;;  %v671_v13 = vadd.f32 %v670_v9, %v640_v8 }
 0x11c   : > { %v672_v33 = vadd.f32 %v671_v13, %v641_v12  ;;  %v604_v14 = vadd.f32 %v603_v27, %v1462_v57 }
 0x11e   : > { %v605_v16 = vadd.f32 %v1452_v40, %v604_v14  ;;  %v673_v18 = vadd.f32 %v672_v33, %v642_v15  ;;  %v647_v40 = vmul.f32 %v1468_v0, %v1468_v0 }
 0x120   : > { %v674_v19 = vadd.f32 %v673_v18, %v643_v25  ;;  %v606_v20 = vadd.f32 %v1458_v50, %v605_v16  ;;  %v648_v50 = vmul.f32 %v1474_v10, %v1474_v10 }
 0x122   : > { %v607_v45 = vadd.f32 %v606_v20, %v1472_v5  ;;  %v675_v22 = vadd.f32 %v674_v19, %v644_v29 }
 0x124   : > { %v676_v23 = vadd.f32 %v675_v22, %v645_v21  ;;  %v608_v57 = vadd.f32 %v607_v45, %v1478_v17 }
 0x126   : > { %v609_v28 = vadd.f32 %v1468_v0, %v608_v57  ;;  %v677_v30 = vadd.f32 %v676_v23, %v646_v26  ;;  %v651_v0 = vmul.f32 %v1484_v24, %v1484_v24 }
 0x128   : > { %v678_v31 = vadd.f32 %v677_v30, %v647_v40  ;;  %v610_v5 = vadd.f32 %v1474_v10, %v609_v28 }
 0x12a   : > { %v611_v34 = vadd.f32 %v610_v5, %v1488_v32  ;;  %v679_v36 = vadd.f32 %v678_v31, %v648_v50 }
 0x12c   : > { %v680_v17 = vadd.f32 %v679_v36, %v649_v35  ;;  %v612_v37 = vadd.f32 %v611_v34, %v572_v47 }
 0x12e   : > { %v613_v41 = vadd.f32 %v1484_v24, %v612_v37  ;;  %v681_v42 = vadd.f32 %v680_v17, %v650_v39 }
 0x130   : > { %v614_v10 = vadd.f32 %v1490_v38, %v613_v41  ;;  %v682_v44 = vadd.f32 %v681_v42, %v651_v0 }
 0x132   : > { %v615_v46 = vrot.slane %v614_v10, 4  ;;  %v683_v48 = vadd.f32 %v682_v44, %v652_v43 }
 0x134   : > { %v616_v32 = vadd.f32 %v615_v46, %v614_v10  ;;  %v684_v49 = vrot.slane %v683_v48, 4 }
 0x136   : > { %v617_v51 = vrot.slane %v616_v32, 2  ;;  %v685_v52 = vadd.f32 %v684_v49, %v683_v48 }
 0x138   : > { %v618_v47 = vadd.f32 %v617_v51, %v616_v32  ;;  %v686_v53 = vrot.slane %v685_v52, 2 }
 0x13a   : > { %v619_v54 = vrot.slane %v618_v47, 1  ;;  %v687_v55 = vadd.f32 %v686_v53, %v685_v52 }
 0x13c   : > { %v688_v24 = vrot.slane %v687_v55, 1  ;;  %v620_v38 = vadd.f32 %v619_v54, %v618_v47 }
 0x13e   : > { %v689_v56 = vadd.f32 %v688_v24, %v687_v55 }
 0x140   : > { %v691_v58 = vsel %vm690_vm0, %v620_v38, %v689_v56 }
 0x141   : > { %692 = vst [vmem:[%s229_s20] sm:$0x3] %v691_v58 }
 0x142 PF: > { %s14_s14 = sadd.s32 1, %s1338_s14   ;;  %s1562_s12 = smov %s1334_s13 }
 0x143   : > { %p11_p6 = scmp.ge.s32.totalorder %s14_s14, 4   ;;  %s1563_s13 = smov %s1565_s15 }
 0x145   :  { %13 = sbr.rel (!%p11_p6) target bundleno = 2 (0x2), region = 73 }

</bundles_post_ra>
